<compile_context>
chip_gen: v7x
topology: tpu7x:2x2x1
jax: 0.10.0
libtpu: 0.0.40
codegen_flags: <defaults>
</compile_context>

<pallas_src>
import functools
import math

import jax
import jax.numpy as jnp
from jax.experimental import pallas as pl
from jax.experimental.pallas import tpu as pltpu

EPS = 1e-5


def _round_up(v, m):
    return (v + m - 1) // m * m


# ---------------------------------------------------------------------------
# Pass 1: per-channel BatchNorm statistics, reduction over tiled P axis.
# Emits scale = 1/sqrt(var + eps) and shift = -mean * scale (pre-fused affine).
# ---------------------------------------------------------------------------
def _bn_stats_kernel(x_ref, scale_ref, shift_ref, sum_ref, sumsq_ref, *, inv_count):
    i = pl.program_id(0)

    @pl.when(i == 0)
    def _():
        sum_ref[...] = jnp.zeros_like(sum_ref)
        sumsq_ref[...] = jnp.zeros_like(sumsq_ref)

    x = x_ref[...]                                        # (C, TILE_P) f32
    sum_ref[...] += jnp.sum(x, axis=1, keepdims=True)     # single sweep of x
    sumsq_ref[...] += jnp.sum(x * x, axis=1, keepdims=True)

    @pl.when(i == pl.num_programs(0) - 1)
    def _():
        mean = sum_ref[...] * inv_count
        var = jnp.maximum(sumsq_ref[...] * inv_count - mean * mean, 0.0)
        scale = jax.lax.rsqrt(var + EPS)
        scale_ref[...] = scale
        shift_ref[...] = -mean * scale


# ---------------------------------------------------------------------------
# Pass 2: normalize (FMA) + fused gamma/beta 3x3 conv (MXU) + SPADE modulation.
# ---------------------------------------------------------------------------
def _spade_mod_kernel(scale_ref, shift_ref, x_ref, rows_ref, w_ref, out_ref, *, W, C):
    # scale/shift: (C, 1) f32 (resident)      x: (C, TILE_P) f32
    # rows: (KKC_pad, TILE_P) bf16  -- K row-shifted map copies + ones row (+pad)
    # w:    (K, 2C, KKC_pad) bf16   -- per-column-tap fused gamma|beta weights
    xn = x_ref[...] * scale_ref[...] + shift_ref[...]

    rows = rows_ref[...]
    tile_p = rows.shape[1]
    # TILE_P is a multiple of W, so the pixel x-coordinate is lane % W.
    lane_x = jax.lax.broadcasted_iota(jnp.int32, (1, tile_p), 1) % W

    gb = None
    for dx in (-1, 0, 1):                  # the 3 column taps of the 3x3 kernel
        w_slab = w_ref[dx + 1]             # (2C, KKC_pad) bf16
        if dx == 0:
            r = rows
        else:
            # result[p] = rows[p + dx]; wrapped / cross-row lanes are exactly
            # the out-of-image columns, which the mask zeroes out.
            r = pltpu.roll(rows, shift=(-dx) % tile_p, axis=1)
            valid = (lane_x >= 1) if dx == -1 else (lane_x <= W - 2)
            r = jnp.where(valid, r, jnp.zeros_like(r))
        d = jnp.dot(w_slab, r, preferred_element_type=jnp.float32)  # (2C, TILE_P)
        gb = d if gb is None else gb + d

    gamma = gb[0:C, :]
    beta = gb[C:2 * C, :]
    out_ref[...] = xn * (1.0 + gamma) + beta


# ---------------------------------------------------------------------------
# Wrapper: layout glue (NCHW -> channel-major slabs) + the two pallas_calls.
# ---------------------------------------------------------------------------
def _pick_tile_p(P_pad, W, C, kkc_pad, budget_bytes=16 * 2**20):
    """Largest tile that is a multiple of lcm(128, W), divides P_pad, fits budget."""
    unit = 128 * W // math.gcd(128, W)
    bytes_per_lane = 2 * (4 * C + 2 * kkc_pad + 4 * C)   # dbl-buffered x, rows(bf16), out
    cap = max(unit, (budget_bytes // bytes_per_lane) // unit * unit)
    t = min(P_pad, cap)
    while P_pad % t:
        t -= unit
    return t


def spade_forward(x, m, wg, bg, wb, bb, *, tile_p=None):
    """x: (N,C,H,W) f32; m: (N,Cin,Hm,Wm) f32; wg/wb: (C,Cin,K,K); bg/bb: (C,)."""
    N, C, H, W = x.shape
    Cin, K = wg.shape[1], wg.shape[2]
    P = N * H * W
    KKC = K * Cin + 1                      # + bias (ones) row
    KKC_pad = _round_up(KKC, 16)           # bf16 sublane-tile aligned

    # ---- glue: nearest-neighbour upsample (F.interpolate default) ----------
    Hm, Wm = m.shape[2], m.shape[3]
    hidx = (jnp.arange(H) * Hm // H).astype(jnp.int32)
    widx = (jnp.arange(W) * Wm // W).astype(jnp.int32)
    m_up = m[:, :, hidx[:, None], widx[None, :]]                     # (N,Cin,H,W)

    # ---- glue: K row-shifted copies (vertical taps), NOT full 9x im2col ----
    # Row ky*Cin + c holds m_up[:, c] shifted by dy = ky-1 with zero padding.
    mpad = jnp.pad(m_up, ((0, 0), (0, 0), (1, 1), (0, 0)))
    rows = jnp.stack([mpad[:, :, ky:ky + H, :] for ky in range(K)], axis=0)
    rows = rows.transpose(0, 2, 1, 3, 4).reshape(K * Cin, P)         # (K*Cin, P)
    rows = jnp.concatenate([rows, jnp.ones((1, P), rows.dtype)], axis=0)  # bias row
    rows = jnp.pad(rows, ((0, KKC_pad - KKC), (0, 0)))

    x2 = x.transpose(1, 0, 2, 3).reshape(C, P)                       # (C, P) f32

    # ---- pad the pixel axis to a lane-dense, row-aligned multiple ----------
    # Zero pixels add 0 to sum / sumsq (stats divide by the real P) and the
    # padded output lanes are sliced off, so padding is exact.
    unit = 128 * W // math.gcd(128, W)
    P_pad = _round_up(P, unit)
    if P_pad != P:
        x2 = jnp.pad(x2, ((0, 0), (0, P_pad - P)))
        rows = jnp.pad(rows, ((0, 0), (0, P_pad - P)))
    rows_b = rows.astype(jnp.bfloat16)

    # ---- glue: fused (gamma|beta) weight slab per column tap, bias folded ---
    w_cat = jnp.concatenate([wg, wb], axis=0)                        # (2C,Cin,K,K)
    bias = jnp.concatenate([bg, bb], axis=0)[:, None]                # (2C,1)
    w_t = w_cat.transpose(0, 2, 1, 3)                                # (2C,K,Cin,K)
    slabs = []
    for kx in range(K):
        s = w_t[:, :, :, kx].reshape(2 * C, K * Cin)                 # row = ky*Cin+c
        bcol = bias if kx == K // 2 else jnp.zeros_like(bias)        # bias on centre tap
        s = jnp.concatenate([s, bcol], axis=1)
        s = jnp.pad(s, ((0, 0), (0, KKC_pad - KKC)))
        slabs.append(s)
    w_all = jnp.stack(slabs, axis=0).astype(jnp.bfloat16)            # (K,2C,KKC_pad)

    if tile_p is None:
        tile_p = _pick_tile_p(P_pad, W, C, KKC_pad)
    assert tile_p % 128 == 0 and tile_p % W == 0 and P_pad % tile_p == 0
    n_tiles = P_pad // tile_p
    vmem_limit = int(min(48 * 2**20,
                         max(16 * 2**20, 4 * tile_p * (8 * C + 2 * KKC_pad))))

    # ---- pass 1: global BN statistics (reduction over P tiles) -------------
    scale, shift = pl.pallas_call(
        functools.partial(_bn_stats_kernel, inv_count=1.0 / P),
        out_shape=(jax.ShapeDtypeStruct((C, 1), jnp.float32),
                   jax.ShapeDtypeStruct((C, 1), jnp.float32)),
        grid=(n_tiles,),
        in_specs=[pl.BlockSpec((C, tile_p), lambda i: (0, i))],
        out_specs=(pl.BlockSpec((C, 1), lambda i: (0, 0)),
                   pl.BlockSpec((C, 1), lambda i: (0, 0))),
        scratch_shapes=[pltpu.VMEM((C, 1), jnp.float32),
                        pltpu.VMEM((C, 1), jnp.float32)],
        compiler_params=pltpu.CompilerParams(
            dimension_semantics=("arbitrary",),
            vmem_limit_bytes=vmem_limit),
    )(x2)

    # ---- pass 2: normalize + conv + modulation, parallel over P tiles ------
    out2 = pl.pallas_call(
        functools.partial(_spade_mod_kernel, W=W, C=C),
        out_shape=jax.ShapeDtypeStruct((C, P_pad), jnp.float32),
        grid=(n_tiles,),
        in_specs=[pl.BlockSpec((C, 1), lambda i: (0, 0)),            # scale (resident)
                  pl.BlockSpec((C, 1), lambda i: (0, 0)),            # shift (resident)
                  pl.BlockSpec((C, tile_p), lambda i: (0, i)),       # x tile
                  pl.BlockSpec((KKC_pad, tile_p), lambda i: (0, i)), # map rows tile
                  pl.BlockSpec((K, 2 * C, KKC_pad), lambda i: (0, 0, 0))],  # weights
        out_specs=pl.BlockSpec((C, tile_p), lambda i: (0, i)),       # lane-dense
        compiler_params=pltpu.CompilerParams(
            dimension_semantics=("parallel",),
            vmem_limit_bytes=vmem_limit),
    )(scale, shift, x2, rows_b, w_all)

    out2 = out2[:, :P]
    return out2.reshape(C, N, H, W).transpose(1, 0, 2, 3)            # back to NCHW


# ---------------------------------------------------------------------------
# Pure-JAX reference (lax.conv) for the correctness check.
# ---------------------------------------------------------------------------
def spade_ref(x, m, wg, bg, wb, bb):
    N, C, H, W = x.shape
    Hm, Wm = m.shape[2], m.shape[3]
    hidx = (jnp.arange(H) * Hm // H).astype(jnp.int32)
    widx = (jnp.arange(W) * Wm // W).astype(jnp.int32)
    m_up = m[:, :, hidx[:, None], widx[None, :]]
    mean = jnp.mean(x, axis=(0, 2, 3), keepdims=True)
    var = jnp.mean((x - mean) ** 2, axis=(0, 2, 3), keepdims=True)
    xn = (x - mean) / jnp.sqrt(var + EPS)
    dn = jax.lax.conv_dimension_numbers(m_up.shape, wg.shape, ('NCHW', 'OIHW', 'NCHW'))
    gamma = jax.lax.conv_general_dilated(m_up, wg, (1, 1), 'SAME',
                                         dimension_numbers=dn) + bg.reshape(1, -1, 1, 1)
    beta = jax.lax.conv_general_dilated(m_up, wb, (1, 1), 'SAME',
                                        dimension_numbers=dn) + bb.reshape(1, -1, 1, 1)
    return xn * (1 + gamma) + beta


if __name__ == "__main__":
    # Shapes consistent with SPADE(norm_nc=4, hidden_nc=8, norm='batch', ks=3)
    N, C, H, W = 2, 4, 16, 16      # x: (N, norm_nc, H, W)
    Cin, K = 8, 3                  # segmentation-map channels (hidden_nc), kernel size
    Hm, Wm = 8, 8                  # lower-res map -> interpolated to 16x16

    key = jax.random.PRNGKey(0)
    k1, k2, k3, k4, k5, k6 = jax.random.split(key, 6)

    def bf16_repr(a):
        # Conv operands go through the MXU in bf16 (perf guidance); round the test
        # inputs to bf16-representable f32 so the f32 reference and the bf16-operand
        # kernel see identical operands and the tight 1e-3 tolerance stays meaningful.
        return a.astype(jnp.bfloat16).astype(jnp.float32)

    x = jax.random.normal(k1, (N, C, H, W), jnp.float32)
    seg_map = bf16_repr(jax.random.normal(k2, (N, Cin, Hm, Wm), jnp.float32))

    fan_in = Cin * K * K
    bound = 1.0 / (fan_in ** 0.5)
    wg = bf16_repr(jax.random.uniform(k3, (C, Cin, K, K), jnp.float32, -bound, bound))
    bg = bf16_repr(jax.random.uniform(k4, (C,), jnp.float32, -bound, bound))
    wb = bf16_repr(jax.random.uniform(k5, (C, Cin, K, K), jnp.float32, -bound, bound))
    bb = bf16_repr(jax.random.uniform(k6, (C,), jnp.float32, -bound, bound))

    # tile_p=128 -> a 4-step grid, exercising the BN accumulator and parallel tiling.
    out = spade_forward(x, seg_map, wg, bg, wb, bb, tile_p=128)
    out = jax.block_until_ready(out)

    ref = jax.block_until_ready(spade_ref(x, seg_map, wg, bg, wb, bb))
    assert out.shape == (N, C, H, W) and out.dtype == jnp.float32
    max_err = float(jnp.max(jnp.abs(out - ref)))
    assert jnp.allclose(out, ref, rtol=1e-3, atol=1e-3), \
        f"Pallas SPADE mismatch vs reference (max abs err {max_err})"

    print("KERNEL_OK")
</pallas_src>

<mosaic_0001>
module attributes {stable_mosaic.version = 11 : i64} {
  func.func @_bn_stats_kernel(%arg0: i32, %arg1: memref<4x128xf32, #tpu.memory_space<vmem>>, %arg2: memref<4x1xf32, #tpu.memory_space<vmem>>, %arg3: memref<4x1xf32, #tpu.memory_space<vmem>>, %arg4: memref<4x1xf32, #tpu.memory_space<vmem>>, %arg5: memref<4x1xf32, #tpu.memory_space<vmem>>) attributes {dimension_semantics = [#tpu.dimension_semantics<arbitrary>], iteration_bounds = array<i64: 4>, scalar_prefetch = 0 : i64, scratch_operands = 2 : i64, tpu.core_type = #tpu.core_type<tc>, window_params = [{transform_indices = @transform_0, window_bounds = array<i64: 4, 128>}, {pipeline_mode = #tpu.pipeline_mode<synchronous>, transform_indices = @transform_1, window_bounds = array<i64: 4, 1>}, {pipeline_mode = #tpu.pipeline_mode<synchronous>, transform_indices = @transform_2, window_bounds = array<i64: 4, 1>}]} {
    %c0_i32 = arith.constant 0 : i32
    %0 = arith.cmpi eq, %arg0, %c0_i32 : i32
    %1 = arith.extui %0 : i1 to i32
    %c0_i32_0 = arith.constant 0 : i32
    %2 = arith.cmpi ne, %1, %c0_i32_0 : i32
    scf.if %2 {
      %cst_12 = arith.constant 0.000000e+00 : f32
      %18 = vector.broadcast %cst_12 : f32 to vector<4x1xf32>
      %c0_13 = arith.constant 0 : index
      %c0_14 = arith.constant 0 : index
      %19 = vector.load %arg4[%c0_13, %c0_14] : memref<4x1xf32, #tpu.memory_space<vmem>>, vector<4x1xf32>
      tpu.vector_store %arg4[%c0_13, %c0_14], %18 {strides = array<i32>} : memref<4x1xf32, #tpu.memory_space<vmem>>, vector<4x1xf32>,
      %cst_15 = arith.constant 0.000000e+00 : f32
      %20 = vector.broadcast %cst_15 : f32 to vector<4x1xf32>
      %c0_16 = arith.constant 0 : index
      %c0_17 = arith.constant 0 : index
      %21 = vector.load %arg5[%c0_16, %c0_17] : memref<4x1xf32, #tpu.memory_space<vmem>>, vector<4x1xf32>
      tpu.vector_store %arg5[%c0_16, %c0_17], %20 {strides = array<i32>} : memref<4x1xf32, #tpu.memory_space<vmem>>, vector<4x1xf32>,
    } else {
    }
    %c0 = arith.constant 0 : index
    %c0_1 = arith.constant 0 : index
    %3 = vector.load %arg1[%c0, %c0_1] : memref<4x128xf32, #tpu.memory_space<vmem>>, vector<4x128xf32>
    %c0_2 = arith.constant 0 : index
    %c0_3 = arith.constant 0 : index
    %4 = vector.load %arg4[%c0_2, %c0_3] : memref<4x1xf32, #tpu.memory_space<vmem>>, vector<4x1xf32>
    %cst = arith.constant dense<0.000000e+00> : vector<4xf32>
    %5 = vector.multi_reduction <add>, %3, %cst [1] : vector<4x128xf32> to vector<4xf32>
    %6 = vector.shape_cast %5 : vector<4xf32> to vector<4x1xf32>
    %7 = arith.addf %4, %6 : vector<4x1xf32>
    %c0_4 = arith.constant 0 : index
    %c0_5 = arith.constant 0 : index
    %8 = vector.load %arg4[%c0_4, %c0_5] : memref<4x1xf32, #tpu.memory_space<vmem>>, vector<4x1xf32>
    tpu.vector_store %arg4[%c0_4, %c0_5], %7 {strides = array<i32>} : memref<4x1xf32, #tpu.memory_space<vmem>>, vector<4x1xf32>,
    %c0_6 = arith.constant 0 : index
    %c0_7 = arith.constant 0 : index
    %9 = vector.load %arg5[%c0_6, %c0_7] : memref<4x1xf32, #tpu.memory_space<vmem>>, vector<4x1xf32>
    %10 = arith.mulf %3, %3 : vector<4x128xf32>
    %cst_8 = arith.constant dense<0.000000e+00> : vector<4xf32>
    %11 = vector.multi_reduction <add>, %10, %cst_8 [1] : vector<4x128xf32> to vector<4xf32>
    %12 = vector.shape_cast %11 : vector<4xf32> to vector<4x1xf32>
    %13 = arith.addf %9, %12 : vector<4x1xf32>
    %c0_9 = arith.constant 0 : index
    %c0_10 = arith.constant 0 : index
    %14 = vector.load %arg5[%c0_9, %c0_10] : memref<4x1xf32, #tpu.memory_space<vmem>>, vector<4x1xf32>
    tpu.vector_store %arg5[%c0_9, %c0_10], %13 {strides = array<i32>} : memref<4x1xf32, #tpu.memory_space<vmem>>, vector<4x1xf32>,
    %c3_i32 = arith.constant 3 : i32
    %15 = arith.cmpi eq, %arg0, %c3_i32 : i32
    %16 = arith.extui %15 : i1 to i32
    %c0_i32_11 = arith.constant 0 : i32
    %17 = arith.cmpi ne, %16, %c0_i32_11 : i32
    scf.if %17 {
      %c0_12 = arith.constant 0 : index
      %c0_13 = arith.constant 0 : index
      %18 = vector.load %arg4[%c0_12, %c0_13] : memref<4x1xf32, #tpu.memory_space<vmem>>, vector<4x1xf32>
      %cst_14 = arith.constant 0.001953125 : f32
      %19 = vector.broadcast %cst_14 : f32 to vector<4x1xf32>
      %20 = arith.mulf %18, %19 : vector<4x1xf32>
      %c0_15 = arith.constant 0 : index
      %c0_16 = arith.constant 0 : index
      %21 = vector.load %arg5[%c0_15, %c0_16] : memref<4x1xf32, #tpu.memory_space<vmem>>, vector<4x1xf32>
      %cst_17 = arith.constant 0.001953125 : f32
      %22 = vector.broadcast %cst_17 : f32 to vector<4x1xf32>
      %23 = arith.mulf %21, %22 : vector<4x1xf32>
      %24 = arith.mulf %20, %20 : vector<4x1xf32>
      %25 = arith.subf %23, %24 : vector<4x1xf32>
      %cst_18 = arith.constant 0.000000e+00 : f32
      %26 = vector.broadcast %cst_18 : f32 to vector<4x1xf32>
      %27 = arith.maximumf %25, %26 : vector<4x1xf32>
      %cst_19 = arith.constant 9.99999974E-6 : f32
      %28 = vector.broadcast %cst_19 : f32 to vector<4x1xf32>
      %29 = arith.addf %27, %28 : vector<4x1xf32>
      %30 = math.rsqrt %29 : vector<4x1xf32>
      %c0_20 = arith.constant 0 : index
      %c0_21 = arith.constant 0 : index
      %31 = vector.load %arg2[%c0_20, %c0_21] : memref<4x1xf32, #tpu.memory_space<vmem>>, vector<4x1xf32>
      tpu.vector_store %arg2[%c0_20, %c0_21], %30 {strides = array<i32>} : memref<4x1xf32, #tpu.memory_space<vmem>>, vector<4x1xf32>,
      %cst_22 = arith.constant 0.000000e+00 : f32
      %32 = vector.broadcast %cst_22 : f32 to vector<4x1xf32>
      %33 = arith.subf %32, %20 : vector<4x1xf32>
      %34 = arith.mulf %33, %30 : vector<4x1xf32>
      %c0_23 = arith.constant 0 : index
      %c0_24 = arith.constant 0 : index
      %35 = vector.load %arg3[%c0_23, %c0_24] : memref<4x1xf32, #tpu.memory_space<vmem>>, vector<4x1xf32>
      tpu.vector_store %arg3[%c0_23, %c0_24], %34 {strides = array<i32>} : memref<4x1xf32, #tpu.memory_space<vmem>>, vector<4x1xf32>,
    } else {
    }
    return
  }
  func.func @transform_0(%arg0: i32) -> (i32, i32) {
    %c0_i32 = arith.constant 0 : i32
    %c0_i32_0 = arith.constant 0 : i32
    return %c0_i32, %arg0 : i32, i32
  }
  func.func @transform_1(%arg0: i32) -> (i32, i32) {
    %c0_i32 = arith.constant 0 : i32
    %c0_i32_0 = arith.constant 0 : i32
    %c0_i32_1 = arith.constant 0 : i32
    return %c0_i32, %c0_i32_0 : i32, i32
  }
  func.func @transform_2(%arg0: i32) -> (i32, i32) {
    %c0_i32 = arith.constant 0 : i32
    %c0_i32_0 = arith.constant 0 : i32
    %c0_i32_1 = arith.constant 0 : i32
    return %c0_i32, %c0_i32_0 : i32, i32
  }
}

</mosaic_0001>

<bundles_post_ra>
// kernel: tpu_custom_call.1
= control target key start
LH: loop header
LB: loop body
LE: loop exit
PB: predicated region body
PF: predicated region fallthrough
CT: control target
= control target key end

     0   :  { %8 = vsyncpa [#allocation5], 0  ;;  %s479_s0 = inlined_call_operand.hbm [shape: f32[4,512], index: 0, kind: input, shape index: {}]   ;;  %s480_s1 = inlined_call_operand.vmem [shape: f32[4,1], index: 1, kind: output, shape index: {0}]   ;;  %s481_s2 = inlined_call_operand.vmem [shape: f32[4,1], index: 2, kind: output, shape index: {1}]  }
   0x1   :  { %10 = vsyncpa [#allocation5 + $0x1], 0  ;;  %s365_s9 = smov 0   ;;  %s367_s10 = smov 0  }
   0x2   :  { %s369_s11 = smov 0   ;;  %s371_s12 = smov 0  }
   0x3 LB: > { %s384_s13 = sadd.s32 4294967295, %s346_s12   ;;  %s387_s14 = sadd.s32 1, %s346_s12   ;;  %s346_s12 = sphi %s371_s12, %s489_s12   ;;  %s342_s11 = sphi %s369_s11, %s488_s11   ;;  %s338_s10 = sphi %s367_s10, %s487_s10   ;;  %s334_s9 = sphi %s365_s9, %s486_s9  }
   0x4   : > { %s20_s15 = ssub.s32 %s346_s12, %s387_s14  ;;  %s23_s16 = sadd.s32 1, %s342_s11 }
   0x5   : > { %p21_p0 = scmp.eq.s32.totalorder %s20_s15, 0  ;;  %p30_p1 = scmp.ne.s32.totalorder %s342_s11, %s338_s10 }
   0x6   : > { %p31_p2 = scmp.eq.s32.totalorder %s346_s12, 0  ;;  %p36_p3 = scmp.ne.s32.totalorder %s338_s10, %s334_s9 }
   0x7   : > { %s397_s17 = scalar_select %p21_p0, %s342_s11, %s23_s16  }
   0x8   : > { %p32_p4 = por %p31_p2, %p30_p1  ;;  %p37_p5 = scmp.eq.s32.totalorder %s384_s13, 0 }
   0x9   : > { %p246_p6 = scmp.lt.s32.totalorder %s346_s12, 4  ;;  %s102_s19 = sand.u32 1, %s342_s11  }
   0xa   : > { %p401_p7 = por %p37_p5, %p36_p3  ;;  %s232_s20 = sshll.u32 %s102_s19, 2 }
   0xb   : > { %s233_s21 = sshll.u32 %s346_s12, 6  ;;  %s106_s25 = scalar_lea.vmem [#allocation4], %s232_s20 }
   0xc   : > { %s410_s24 = scalar_lea.hbm %s479_s0, %s233_s21  ;;  %s113_s26 = sshll.u32 %s106_s25, 4  ;;  %s412_s26 = int_to_ptr.vmem [resolvable:$true] %s113_s26 }
   0xd   : > { %p414_p8 = pnand %p246_p6, %p32_p4  ;;  %s103_s28 = scalar_lea.sflag [#allocation5], %s102_s19 }
   0xe   : > { %s282_s29 = scalar_lea.hbm %s410_s24, 64  ;;  %s287_s4 = scalar_lea.hbm %s479_s0, 256 }
   0xf   : > { %p283_p11 = scmp.ne.s32.totalorder %s410_s24, %s282_s29  ;;  %p284_p12 = pneg %p414_p8 }
  0x10   : > { %p288_p1 = scmp.lt.u32.totalorder %s410_s24, %s479_s0  ;;  %p289_p2 = scmp.lt.u32.totalorder %s287_s4, %s282_s29 }
  0x11   : > { %p285_p13 = pnand %p284_p12, %p283_p11  ;;  %p291_p4 = scmp.lt.u32.totalorder %s282_s29, %s410_s24 }
  0x12   : > { %p290_p3 = por %p289_p2, %p288_p1 }
  0x13   : > { %p286_p0 = pneg %p285_p13 }
  0x14   : > { %p292_p5 = por %p291_p4, %p290_p3 }
  0x16   : > { %p293_p6 = pnand %p292_p5, %p286_p0 }
  0x18   : > { %296 = shalt.err (!%p293_p6)
}
  0x19   : > { %s297_s7 = scalar_lea.vmem %s412_s26, 64  ;;  %s348_s8 = smov [#allocation4]  }
  0x1a   : > { %p298_p11 = scmp.ne.s32.totalorder %s412_s26, %s297_s7  ;;  %s302_s9 = sshll.u32 %s348_s8, 4  ;;  %s303_s9 = int_to_ptr.vmem [resolvable:$false] %s302_s9 }
  0x1b   : > { %s304_s15 = scalar_lea.vmem %s303_s9, 128  ;;  %p305_p10 = scmp.lt.s32.totalorder %s412_s26, %s303_s9 }
  0x1c   : > { %p300_p13 = pnand %p298_p11, %p284_p12  ;;  %p306_p1 = scmp.lt.s32.totalorder %s304_s15, %s297_s7 }
  0x1e   : > { %p301_p9 = pneg %p300_p13  ;;  %p307_p2 = por %p306_p1, %p305_p10 }
  0x20   : > { %p308_p3 = pnand %p307_p2, %p301_p9 }
  0x22   : > { %311 = shalt.err (!%p308_p3)
}
  0x23   : > { %245 = dma.hbm_to_vmem [thread:$0]  (!%p414_p8), %s410_s24, 64, %s412_s26, %s103_s28  }
  0x24   : > { %p484_p0 = scmp.lt.s32.totalorder %s346_s12, 5  ;;  %p485_p4 = scmp.ge.s32.totalorder %s346_s12, 1 }
  0x26   : > { %p119_p12 = pnand %p485_p4, %p484_p0 }
  0x27   : > { %s124_s16 = sand.u32 (!%p119_p12), 1, %s338_s10  }
  0x28   : > { %122 = sbr.rel (%p119_p12) target bundleno = 237 (0xed), region = 24  ;;  %s235_s19 = sshll.u32 (!%p119_p12), %s124_s16, 2 }
  0x29   : > { %s125_s20 = scalar_lea.sflag (!%p119_p12), [#allocation5], %s124_s16  ;;  %s128_s21 = scalar_lea.vmem (!%p119_p12), [#allocation4], %s235_s19 }
  0x2f   : > { %329 = dma.done.wait (%p401_p7), %s125_s20, 64  }
  0x30   : > { %331 = vsyncadd (%p401_p7), %s125_s20, 4294967232  ;;  %p236_p9 = scmp.ne.s32.totalorder %s384_s13, 0 }
  0x31   : > { %vm148_vm0 = vcmask (!%p236_p9), 3072   ;;  %v349_v0 = vmov (!%p236_p9), 0.0  }
  0x32   : > { %147 = sbr.rel (%p236_p9) target bundleno = 57 (0x39), region = 32  ;;  %149 = vst.msk [vmem:[#allocation2] sm:$0xf] (!%p236_p9), %vm148_vm0, %v349_v0  ;;  %150 = vst.msk [vmem:[#allocation3] sm:$0xf] (!%p236_p9), %vm148_vm0, %v349_v0 }
  0x39 PF: > { %v151_v1 = vld [vmem:[%s128_s21] sm:$0xf]  ;;  %vm153_vm1 = vcmask 1043456   ;;  %v152_v5 = vld [vmem:[#allocation2] sm:$0xf]  ;;  %vm158_vm2 = vcmask 3072  }
  0x3a   : > { %v154_v2 = vsel %vm153_vm1, %v151_v1, 0.0  ;;  %v161_v3 = vmul.f32 %v151_v1, %v151_v1  ;;  %v160_v8 = vld [vmem:[#allocation3] sm:$0xf]  ;;  %p237_p7 = scmp.ne.s32.totalorder %s384_s13, 3 }
  0x3b   : > { %155 = vadd.xlane.f32.xlu0 %v154_v2 }
  0x3c   : > { %v162_v4 = vsel %vm153_vm1, %v161_v3, 0.0 }
  0x3f   : > { %163 = vadd.xlane.f32.xlu0 %v162_v4 }
  0xc8   : > { %v156_v6 = vpop.xlane.xlu0 %155 }
  0xc9   : > { %v157_v7 = vadd.f32 %v156_v6, %v152_v5  ;;  %170 = sbr.rel (%p237_p7) target bundleno = 237 (0xed), region = 36 }
  0xcb   : > { %159 = vst.msk [vmem:[#allocation2] sm:$0xf] %vm158_vm2, %v157_v7 }
  0xcc   : > { %v164_v9 = vpop.xlane.xlu0 %163 }
  0xcd   : > { %v165_v10 = vadd.f32 %v164_v9, %v160_v8 }
  0xcf   : > { %166 = vst.msk [vmem:[#allocation3] sm:$0xf] %vm158_vm2, %v165_v10 }
  0xd2   : > { %v171_v11 = vld [vmem:[#allocation2] sm:$0xf] }
  0xd3   : > { %v172_v13 = vmul.f32 0.001953125, %v171_v11 }
  0xd5   : > { %v175_v15 = vmul.f32 %v172_v13, %v172_v13  ;;  %v181_v19 = vsub.f32 0.0, %v172_v13 }
  0xd6   : > { %v173_v12 = vld [vmem:[#allocation3] sm:$0xf] }
  0xd7   : > { %v174_v14 = vmul.f32 0.001953125, %v173_v12 }
  0xd9   : > { %v176_v16 = vsub.f32 %v174_v14, %v175_v15 }
  0xdb   : > { %v177_v17 = vmax.f32 %v176_v16, 0.0 }
  0xdd   : > { %v178_v18 = vadd.f32 1e-05, %v177_v17 }
  0xdf   : > { %280 = vrsqrt.f32 %v178_v18 }
  0xe9   : > { %v281_v20 = vpop.eup %280 }
  0xea   : > { %180 = vst.msk [vmem:[%s480_s1] sm:$0xf] %vm158_vm2, %v281_v20  ;;  %v182_v21 = vmul.f32 %v281_v20, %v181_v19 }
  0xec   : > { %183 = vst.msk [vmem:[%s481_s2] sm:$0xf] %vm158_vm2, %v182_v21 }
  0xed PF: > { %p13_p8 = scmp.ge.s32.totalorder %s387_s14, 6   ;;  %s486_s9 = smov %s338_s10 }
  0xee   : > { %s487_s10 = smov %s342_s11  ;;  %s488_s11 = smov %s397_s17 }
  0xef   : > { %s489_s12 = smov %s387_s14  ;;  %15 = sbr.rel (!%p13_p8) target bundleno = 3 (0x3), region = 76 }
  0xf6   :  { %201 = vsyncpa [#allocation5], 1 }
  0xf7   :  { %203 = vsyncpa [#allocation5 + $0x1], 1 }

</bundles_post_ra>
